<compile_context>
chip_gen: v6e
topology: v6e:2x2x1
jax: 0.10.0
libtpu: 0.0.40
codegen_flags: <defaults>
</compile_context>

<pallas_src>
import functools
import math

import jax
import jax.numpy as jnp
from jax import lax
from jax.experimental import pallas as pl
from jax.experimental.pallas import tpu as pltpu

_SQRT_2_OVER_PI = 0.7978845608028654
_INV_SQRT2 = 0.7071067811865476


def _ffn_kernel(x_ref, w1_ref, b1_ref, w2_ref, b2_ref, o_ref, *,
                approx_gelu, mxu_dtype):
    # x_ref: (TN, D)   w1_ref: (D, H)  b1_ref: (1, H)
    # w2_ref: (H, D)   b2_ref: (1, D)  o_ref: (TN, D)
    x = x_ref[...]
    w1 = w1_ref[...]
    w2 = w2_ref[...]
    if mxu_dtype is not None:
        # Optional bf16 MXU operands (f32 accumulate) — biggest win on v5e.
        x = x.astype(mxu_dtype)
        w1 = w1.astype(mxu_dtype)
        w2 = w2.astype(mxu_dtype)

    # First linear: native-dtype operands on the MXU, f32 accumulate.
    h = jnp.dot(x, w1, preferred_element_type=jnp.float32)
    h = h + b1_ref[...].astype(jnp.float32)

    if approx_gelu:
        # tanh-approx GELU: the transcendental goes to the EUP (its own VLIW
        # slot), leaving the 4 VALU slots mostly free.
        inner = _SQRT_2_OVER_PI * (h + 0.044715 * (h * h * h))
        h = 0.5 * h * (1.0 + jnp.tanh(inner))
    else:
        # Exact erf GELU (bit-parity with torch.nn.GELU default).
        h = 0.5 * h * (1.0 + lax.erf(h * _INV_SQRT2))

    # Second linear.
    y = jnp.dot(h.astype(w2.dtype), w2, preferred_element_type=jnp.float32)
    y = y + b2_ref[...].astype(jnp.float32)
    o_ref[...] = y.astype(o_ref.dtype)


def _round_up(x, m):
    return (x + m - 1) // m * m


def _choose_row_tile(n, target, sub):
    """Largest tile <= target that divides n, is a multiple of `sub`, and (when n
    allows) leaves >= 4 grid steps.  Returns None if no divisor exists."""
    cap = min(target, max(sub, n // 4))
    cap = max(sub, (cap // sub) * sub)
    for t in range(cap, sub - 1, -sub):
        if n % t == 0:
            return t
    return None


def _vmem_limit_bytes(tn, d, hdim, x_bytes, w_bytes, out_bytes):
    act = 2 * tn * d * (x_bytes + out_bytes)                    # double-buffered x / out
    wts = 2 * (d * hdim + hdim + hdim * d + d) * w_bytes        # double-buffered params
    tmp = 2 * tn * hdim * 4                                     # f32 hidden + temporaries
    est = 4 * (act + wts + tmp)                                 # generous margin
    return int(min(max(est, 8 * 1024 * 1024), 48 * 1024 * 1024))


def feed_forward(x, w1, b1, w2, b2, *, row_tile=1024, approx_gelu=True,
                 mxu_dtype=None):
    """x: (..., dim); w1: (dim, hidden); b1: (hidden,); w2: (hidden, dim);
    b2: (dim,).  Returns an array with the same shape/dtype as x."""
    orig_shape = x.shape
    d = orig_shape[-1]
    hdim = w1.shape[1]
    n = math.prod(orig_shape[:-1])
    x2 = x.reshape(n, d)

    # Sublane multiple: 16 for packed dtypes (bf16), 8 for f32.
    sub = 16 if jnp.dtype(x.dtype).itemsize < 4 else 8

    tn = _choose_row_tile(n, row_tile, sub)
    padded_rows = False
    if tn is None:
        # Rare fallback: pad rows to a tile multiple (small copy), slice after.
        tn = min(row_tile, max(sub, _round_up(max(n // 4, 1), sub)))
        n_run = _round_up(n, tn)
        x2 = jnp.pad(x2, ((0, n_run - n), (0, 0)))
        padded_rows = True
    else:
        n_run = n

    kernel = functools.partial(_ffn_kernel, approx_gelu=approx_gelu,
                               mxu_dtype=mxu_dtype)

    out2d = pl.pallas_call(
        kernel,
        out_shape=jax.ShapeDtypeStruct((n_run, d), x.dtype),
        grid=(n_run // tn,),
        in_specs=[
            pl.BlockSpec((tn, d), lambda i: (i, 0)),      # x rows (native width)
            pl.BlockSpec((d, hdim), lambda i: (0, 0)),    # W1 (resident)
            pl.BlockSpec((1, hdim), lambda i: (0, 0)),    # b1
            pl.BlockSpec((hdim, d), lambda i: (0, 0)),    # W2 (resident)
            pl.BlockSpec((1, d), lambda i: (0, 0)),       # b2
        ],
        out_specs=pl.BlockSpec((tn, d), lambda i: (i, 0)),
        compiler_params=pltpu.CompilerParams(
            dimension_semantics=("parallel",),
            vmem_limit_bytes=_vmem_limit_bytes(
                tn, d, hdim,
                jnp.dtype(x.dtype).itemsize,
                jnp.dtype(w1.dtype).itemsize,
                jnp.dtype(x.dtype).itemsize),
        ),
    )(x2, w1, b1.reshape(1, hdim), w2, b2.reshape(1, d))

    if padded_rows:
        out2d = out2d[:n]
    return out2d.reshape(orig_shape)


def _reference(x, w1, b1, w2, b2, approx_gelu):
    xf = x.astype(jnp.float32)
    h = jnp.einsum("...d,dh->...h", xf, w1.astype(jnp.float32),
                   precision=lax.Precision.HIGHEST) + b1.astype(jnp.float32)
    if approx_gelu:
        h = 0.5 * h * (1.0 + jnp.tanh(_SQRT_2_OVER_PI * (h + 0.044715 * h ** 3)))
    else:
        h = 0.5 * h * (1.0 + lax.erf(h * _INV_SQRT2))
    y = jnp.einsum("...h,hd->...d", h, w2.astype(jnp.float32),
                   precision=lax.Precision.HIGHEST) + b2.astype(jnp.float32)
    return y


if __name__ == "__main__":
    # FeedForward inside a SwinBlock of CrossSwinTransformer:
    # dim = n_feats = 64, hidden = 4 * n_feats = 256, tokens from a
    # (batch, n_h, n_w, dim) feature map.
    batch, n_h, n_w = 2, 16, 16
    dim, hidden_dim = 64, 4 * 64

    key = jax.random.PRNGKey(0)
    kx, k1, k2, k3, k4 = jax.random.split(key, 5)

    x = jax.random.normal(kx, (batch, n_h, n_w, dim), dtype=jnp.float32)

    # PyTorch-Linear-style uniform init bounds (deterministic).
    bound1 = dim ** -0.5
    w1 = jax.random.uniform(k1, (dim, hidden_dim), jnp.float32, -bound1, bound1)
    b1 = jax.random.uniform(k2, (hidden_dim,), jnp.float32, -bound1, bound1)
    bound2 = hidden_dim ** -0.5
    w2 = jax.random.uniform(k3, (hidden_dim, dim), jnp.float32, -bound2, bound2)
    b2 = jax.random.uniform(k4, (dim,), jnp.float32, -bound2, bound2)

    # 1) f32, exact (erf) GELU — matches torch.nn.GELU default semantics.
    out_exact = jax.block_until_ready(
        feed_forward(x, w1, b1, w2, b2, approx_gelu=False))
    ref_exact = _reference(x, w1, b1, w2, b2, approx_gelu=False)
    assert out_exact.shape == x.shape
    err = float(jnp.max(jnp.abs(out_exact - ref_exact)))
    assert err < 1e-2, err

    # 2) f32, tanh-approx GELU (default fast path).
    out_tanh = jax.block_until_ready(feed_forward(x, w1, b1, w2, b2))
    ref_tanh = _reference(x, w1, b1, w2, b2, approx_gelu=True)
    err = float(jnp.max(jnp.abs(out_tanh - ref_tanh)))
    assert err < 1e-2, err

    # 3) bf16 operands through the MXU natively, f32 accumulate (loose check).
    out_bf16 = jax.block_until_ready(
        feed_forward(x.astype(jnp.bfloat16), w1.astype(jnp.bfloat16),
                     b1.astype(jnp.bfloat16), w2.astype(jnp.bfloat16),
                     b2.astype(jnp.bfloat16)))
    assert out_bf16.shape == x.shape
    err = float(jnp.max(jnp.abs(out_bf16.astype(jnp.float32) - ref_tanh)))
    assert err < 0.1, err

    # 4) f32 inputs but bf16 MXU operands (the v5e-friendly option).
    out_mxu = jax.block_until_ready(
        feed_forward(x, w1, b1, w2, b2, mxu_dtype=jnp.bfloat16))
    err = float(jnp.max(jnp.abs(out_mxu - ref_tanh)))
    assert err < 0.1, err

    print("KERNEL_OK")
</pallas_src>

<mosaic_0001>
module attributes {stable_mosaic.version = 11 : i64} {
  func.func @_ffn_kernel(%arg0: i32, %arg1: memref<128x64xf32, #tpu.memory_space<vmem>>, %arg2: memref<64x256xf32, #tpu.memory_space<vmem>>, %arg3: memref<1x256xf32, #tpu.memory_space<vmem>>, %arg4: memref<256x64xf32, #tpu.memory_space<vmem>>, %arg5: memref<1x64xf32, #tpu.memory_space<vmem>>, %arg6: memref<128x64xf32, #tpu.memory_space<vmem>>) attributes {dimension_semantics = [#tpu.dimension_semantics<parallel>], iteration_bounds = array<i64: 4>, scalar_prefetch = 0 : i64, scratch_operands = 0 : i64, tpu.core_type = #tpu.core_type<tc>, window_params = [{transform_indices = @transform_0, window_bounds = array<i64: 128, 64>}, {pipeline_mode = #tpu.pipeline_mode<synchronous>, transform_indices = @transform_1, window_bounds = array<i64: 64, 256>}, {pipeline_mode = #tpu.pipeline_mode<synchronous>, transform_indices = @transform_2, window_bounds = array<i64: 1, 256>}, {pipeline_mode = #tpu.pipeline_mode<synchronous>, transform_indices = @transform_3, window_bounds = array<i64: 256, 64>}, {pipeline_mode = #tpu.pipeline_mode<synchronous>, transform_indices = @transform_4, window_bounds = array<i64: 1, 64>}, {transform_indices = @transform_5, window_bounds = array<i64: 128, 64>}]} {
    %c0 = arith.constant 0 : index
    %c0_0 = arith.constant 0 : index
    %0 = vector.load %arg1[%c0, %c0_0] : memref<128x64xf32, #tpu.memory_space<vmem>>, vector<128x64xf32>
    %c0_1 = arith.constant 0 : index
    %c0_2 = arith.constant 0 : index
    %1 = vector.load %arg2[%c0_1, %c0_2] : memref<64x256xf32, #tpu.memory_space<vmem>>, vector<64x256xf32>
    %c0_3 = arith.constant 0 : index
    %c0_4 = arith.constant 0 : index
    %2 = vector.load %arg4[%c0_3, %c0_4] : memref<256x64xf32, #tpu.memory_space<vmem>>, vector<256x64xf32>
    %cst = arith.constant dense<0.000000e+00> : vector<128x256xf32>
    %3 = tpu.matmul %0, %1, %cst {dimension_numbers = #tpu.dot_dimension_numbers<[1], [0], [0], [1], [0, 0, 1, 1], [], []>} : vector<128x64xf32>, vector<64x256xf32>, vector<128x256xf32> -> vector<128x256xf32>
    %c0_5 = arith.constant 0 : index
    %c0_6 = arith.constant 0 : index
    %4 = vector.load %arg3[%c0_5, %c0_6] : memref<1x256xf32, #tpu.memory_space<vmem>>, vector<1x256xf32>
    %5 = vector.broadcast %4 : vector<1x256xf32> to vector<128x256xf32>
    %6 = arith.addf %3, %5 : vector<128x256xf32>
    %cst_7 = arith.constant 5.000000e-01 : f32
    %7 = vector.broadcast %cst_7 : f32 to vector<128x256xf32>
    %8 = arith.mulf %7, %6 : vector<128x256xf32>
    %cst_8 = arith.constant 0.707106769 : f32
    %9 = vector.broadcast %cst_8 : f32 to vector<128x256xf32>
    %10 = arith.mulf %6, %9 : vector<128x256xf32>
    %11 = math.erf %10 : vector<128x256xf32>
    %cst_9 = arith.constant 1.000000e+00 : f32
    %12 = vector.broadcast %cst_9 : f32 to vector<128x256xf32>
    %13 = arith.addf %12, %11 : vector<128x256xf32>
    %14 = arith.mulf %8, %13 : vector<128x256xf32>
    %cst_10 = arith.constant dense<0.000000e+00> : vector<128x64xf32>
    %15 = tpu.matmul %14, %2, %cst_10 {dimension_numbers = #tpu.dot_dimension_numbers<[1], [0], [0], [1], [0, 0, 1, 1], [], []>} : vector<128x256xf32>, vector<256x64xf32>, vector<128x64xf32> -> vector<128x64xf32>
    %c0_11 = arith.constant 0 : index
    %c0_12 = arith.constant 0 : index
    %16 = vector.load %arg5[%c0_11, %c0_12] : memref<1x64xf32, #tpu.memory_space<vmem>>, vector<1x64xf32>
    %17 = vector.broadcast %16 : vector<1x64xf32> to vector<128x64xf32>
    %18 = arith.addf %15, %17 : vector<128x64xf32>
    %c0_13 = arith.constant 0 : index
    %c0_14 = arith.constant 0 : index
    %19 = vector.load %arg6[%c0_13, %c0_14] : memref<128x64xf32, #tpu.memory_space<vmem>>, vector<128x64xf32>
    tpu.vector_store %arg6[%c0_13, %c0_14], %18 {strides = array<i32>} : memref<128x64xf32, #tpu.memory_space<vmem>>, vector<128x64xf32>,
    return
  }
  func.func @transform_0(%arg0: i32) -> (i32, i32) {
    %c0_i32 = arith.constant 0 : i32
    %c0_i32_0 = arith.constant 0 : i32
    return %arg0, %c0_i32 : i32, i32
  }
  func.func @transform_1(%arg0: i32) -> (i32, i32) {
    %c0_i32 = arith.constant 0 : i32
    %c0_i32_0 = arith.constant 0 : i32
    %c0_i32_1 = arith.constant 0 : i32
    return %c0_i32, %c0_i32_0 : i32, i32
  }
  func.func @transform_2(%arg0: i32) -> (i32, i32) {
    %c0_i32 = arith.constant 0 : i32
    %c0_i32_0 = arith.constant 0 : i32
    %c0_i32_1 = arith.constant 0 : i32
    return %c0_i32, %c0_i32_0 : i32, i32
  }
  func.func @transform_3(%arg0: i32) -> (i32, i32) {
    %c0_i32 = arith.constant 0 : i32
    %c0_i32_0 = arith.constant 0 : i32
    %c0_i32_1 = arith.constant 0 : i32
    return %c0_i32, %c0_i32_0 : i32, i32
  }
  func.func @transform_4(%arg0: i32) -> (i32, i32) {
    %c0_i32 = arith.constant 0 : i32
    %c0_i32_0 = arith.constant 0 : i32
    %c0_i32_1 = arith.constant 0 : i32
    return %c0_i32, %c0_i32_0 : i32, i32
  }
  func.func @transform_5(%arg0: i32) -> (i32, i32) {
    %c0_i32 = arith.constant 0 : i32
    %c0_i32_0 = arith.constant 0 : i32
    return %arg0, %c0_i32 : i32, i32
  }
}

</mosaic_0001>

<bundles_post_ra>
// kernel: tpu_custom_call.1
= control target key start
LH: loop header
LB: loop body
LE: loop exit
PB: predicated region body
PF: predicated region fallthrough
CT: control target
= control target key end

     0   :  { %s1150_s18 = smov 0   ;;  %s1550_s0 = inlined_call_operand.vmem [shape: f32[512,64], index: 0, kind: input, shape index: {}]   ;;  %s1551_s1 = inlined_call_operand.vmem [shape: f32[64,256], index: 1, kind: input, shape index: {}]   ;;  %s1552_s2 = inlined_call_operand.vmem [shape: f32[1,256], index: 2, kind: input, shape index: {}]   ;;  %s1553_s3 = inlined_call_operand.vmem [shape: f32[256,64], index: 3, kind: input, shape index: {}]   ;;  %s1554_s4 = inlined_call_operand.vmem [shape: f32[1,64], index: 4, kind: input, shape index: {}]   ;;  %s1555_s5 = inlined_call_operand.vmem [shape: f32[512,64], index: 5, kind: output, shape index: {}]  }
   0x1 LB: > { %s898_s19 = sadd.s32 4294967295, %s1117_s18   ;;  %p902_p0 = scmp.ge.s32.totalorder %s1117_s18, 1  ;;  %s1117_s18 = sphi %s1150_s18, %s15_s18  }
   0x2   : > { %p188_p1 = scmp.lt.s32.totalorder %s1117_s18, 5 }
   0x4   : > { %p189_p2 = pnand %p902_p0, %p188_p1 }
   0x5   : > { %s903_s26 = sshll.u32 (!%p189_p2), %s898_s19, 4 }
   0x6   : > { %192 = sbr.rel (%p189_p2) target bundleno = 506 (0x1fa), region = 40  ;;  %p217_p3 = scmp.lt.s32.totalorder (!%p189_p2), %s903_s26, 63 }
   0xb   : > { %v259_v0 = vld [vmem:[%s1551_s1 + $0x78] sm:$0xff]  ;;  %v258_v1 = vld [vmem:[%s1551_s1 + $0x70] sm:$0xff]  ;;  %v257_v2 = vld [vmem:[%s1551_s1 + $0x68] sm:$0xff]  ;;  %v1119_v4 = vmov 0.0   ;;  %s1557_s26 = smov (!%p217_p3, %s903_s26), 63  ;;  %vm304_vm0 = vcmask 523264  }
   0xc   : > { %369 = vmatprep.subr.mxu0 %v259_v0  ;;  %v256_v3 = vld [vmem:[%s1551_s1 + $0x60] sm:$0xff]  ;;  %417 = vmatprep.mubr.f32.mxu0 %v1119_v4  ;;  %v255_v5 = vld [vmem:[%s1551_s1 + $0x58] sm:$0xff]  ;;  %v254_v6 = vld [vmem:[%s1551_s1 + $0x50] sm:$0xff]  ;;  %s904_s25 = sshll.u32 %s1557_s26, 3 }
   0xd   : > { %370 = vmatpush1.msra.mxu0 %v258_v1  ;;  %v253_v7 = vld [vmem:[%s1551_s1 + $0x48] sm:$0xff]  ;;  %v252_v8 = vld [vmem:[%s1551_s1 + $0x40] sm:$0xff]  ;;  %v291_v9 = vld [vmem:[%s1553_s3 + $0xf8] sm:$0xff]  ;;  %s1224_s14 = scalar_lea.vmem %s1550_s0, %s904_s25  ;;  %v294_v1 = vlaneseq  ;;  %s1497_s13 = scalar_lea.vmem %s1555_s5, %s904_s25 }
   0xe   : > { %371 = vmatprep.subr.mxu0 %v257_v2  ;;  %v251_v10 = vld [vmem:[%s1551_s1 + $0x38] sm:$0xff]  ;;  %1006 = vmatprep.subr.mxu1 %v291_v9  ;;  %v250_v12 = vld [vmem:[%s1551_s1 + $0x30] sm:$0xff]  ;;  %v249_v14 = vld [vmem:[%s1551_s1 + $0x28] sm:$0xff] }
   0xf   : > { %372 = vmatpush1.msra.mxu0 %v256_v3  ;;  %v275_v11 = vld [vmem:[%s1553_s3 + $0x78] sm:$0xff]  ;;  %v290_v13 = vld [vmem:[%s1553_s3 + $0xf0] sm:$0xff]  ;;  %v248_v16 = vld [vmem:[%s1551_s1 + $0x20] sm:$0xff]  ;;  %v295_v2 = vshrl.u32 %v294_v1, 7 }
  0x10   : > { %373 = vmatprep.subr.mxu0 %v255_v5  ;;  %1022 = vmatpush3.msra.mxu1 %v275_v11  ;;  %v274_v15 = vld [vmem:[%s1553_s3 + $0x70] sm:$0xff]  ;;  %v289_v17 = vld [vmem:[%s1553_s3 + $0xe8] sm:$0xff]  ;;  %v247_v18 = vld [vmem:[%s1551_s1 + $0x18] sm:$0xff] }
  0x11   : > { %374 = vmatpush1.msra.mxu0 %v254_v6  ;;  %1007 = vmatprep.subr.mxu1 %v290_v13  ;;  %v246_v19 = vld [vmem:[%s1551_s1 + $0x10] sm:$0xff]  ;;  %v245_v20 = vld [vmem:[%s1551_s1 + $0x8] sm:$0xff]  ;;  %v244_v22 = vld [vmem:[%s1551_s1] sm:$0xff]  ;;  %v296_v3 = vsub.s32 0, %v295_v2  ;;  %v300_v5 = vsub.s32 1, %v295_v2 }
  0x12   : > { %375 = vmatprep.subr.mxu0 %v253_v7  ;;  %1023 = vmatpush3.msra.mxu1 %v274_v15  ;;  %v273_v21 = vld [vmem:[%s1553_s3 + $0x68] sm:$0xff]  ;;  %v228_v23 = vld [vmem:[%s1224_s14] sm:$0xff]  ;;  %v230_v25 = vld [vmem:[%s1224_s14 + $0x10] sm:$0xff] }
  0x13   : > { %376 = vmatpush1.msra.mxu0 %v252_v8  ;;  %1008 = vmatprep.subr.mxu1 %v289_v17  ;;  %v229_v24 = vld [vmem:[%s1224_s14 + $0x8] sm:$0xff]  ;;  %v231_v26 = vld [vmem:[%s1224_s14 + $0x18] sm:$0xff]  ;;  %v232_v27 = vld [vmem:[%s1224_s14 + $0x20] sm:$0xff] }
  0x14   : > { %377 = vmatprep.subr.mxu0 %v251_v10  ;;  %1024 = vmatpush3.msra.mxu1 %v273_v21  ;;  %v233_v28 = vld [vmem:[%s1224_s14 + $0x28] sm:$0xff]  ;;  %v234_v29 = vld [vmem:[%s1224_s14 + $0x30] sm:$0xff]  ;;  %v235_v30 = vld [vmem:[%s1224_s14 + $0x38] sm:$0xff] }
  0x15   : > { %378 = vmatpush1.msra.mxu0 %v250_v12  ;;  %v236_v31 = vld [vmem:[%s1224_s14 + $0x40] sm:$0xff]  ;;  %v237_v32 = vld [vmem:[%s1224_s14 + $0x48] sm:$0xff]  ;;  %v238_v33 = vld [vmem:[%s1224_s14 + $0x50] sm:$0xff] }
  0x16   : > { %379 = vmatprep.subr.mxu0 %v249_v14  ;;  %v239_v34 = vld [vmem:[%s1224_s14 + $0x58] sm:$0xff]  ;;  %v240_v35 = vld [vmem:[%s1224_s14 + $0x60] sm:$0xff]  ;;  %v241_v36 = vld [vmem:[%s1224_s14 + $0x68] sm:$0xff] }
  0x17   : > { %380 = vmatpush1.msra.mxu0 %v248_v16  ;;  %v242_v37 = vld [vmem:[%s1224_s14 + $0x70] sm:$0xff]  ;;  %v243_v38 = vld [vmem:[%s1224_s14 + $0x78] sm:$0xff]  ;;  %v288_v39 = vld [vmem:[%s1553_s3 + $0xe0] sm:$0xff] }
  0x18   : > { %381 = vmatprep.subr.mxu0 %v247_v18  ;;  %v272_v40 = vld [vmem:[%s1553_s3 + $0x60] sm:$0xff]  ;;  %1009 = vmatprep.subr.mxu1 %v288_v39  ;;  %v287_v41 = vld [vmem:[%s1553_s3 + $0xd8] sm:$0xff]  ;;  %v286_v43 = vld [vmem:[%s1553_s3 + $0xd0] sm:$0xff] }
  0x19   : > { %382 = vmatpush1.msra.mxu0 %v246_v19  ;;  %1025 = vmatpush3.msra.mxu1 %v272_v40  ;;  %v271_v42 = vld [vmem:[%s1553_s3 + $0x58] sm:$0xff]  ;;  %v270_v44 = vld [vmem:[%s1553_s3 + $0x50] sm:$0xff]  ;;  %v285_v45 = vld [vmem:[%s1553_s3 + $0xc8] sm:$0xff] }
  0x1a   : > { %383 = vmatprep.subr.mxu0 %v245_v20  ;;  %1010 = vmatprep.subr.mxu1 %v287_v41  ;;  %v269_v46 = vld [vmem:[%s1553_s3 + $0x48] sm:$0xff]  ;;  %v284_v47 = vld [vmem:[%s1553_s3 + $0xc0] sm:$0xff]  ;;  %v283_v49 = vld [vmem:[%s1553_s3 + $0xb8] sm:$0xff] }
  0x1b   : > { %384 = vmatpush1.msra.mxu0 %v244_v22  ;;  %1026 = vmatpush3.msra.mxu1 %v271_v42  ;;  %v268_v48 = vld [vmem:[%s1553_s3 + $0x40] sm:$0xff]  ;;  %v267_v50 = vld [vmem:[%s1553_s3 + $0x38] sm:$0xff]  ;;  %v282_v51 = vld [vmem:[%s1553_s3 + $0xb0] sm:$0xff] }
  0x1c   : > { %907 = vmatmul.mubr.msk.f32.vlgmr.msra.gmra.mxu0 %vm304_vm0, %v228_v23  ;;  %926 = vmatprep.subr.mxu0 %v291_v9  ;;  %v266_v52 = vld [vmem:[%s1553_s3 + $0x30] sm:$0xff]  ;;  %v281_v53 = vld [vmem:[%s1553_s3 + $0xa8] sm:$0xff]  ;;  %v280_v55 = vld [vmem:[%s1553_s3 + $0xa0] sm:$0xff] }
  0x1d   : > { %423 = vmatprep.mubr.f32.mxu0 %v1119_v4  ;;  %927 = vmatpush3.msra.mxu0 %v275_v11  ;;  %v265_v54 = vld [vmem:[%s1553_s3 + $0x28] sm:$0xff]  ;;  %v264_v56 = vld [vmem:[%s1553_s3 + $0x20] sm:$0xff]  ;;  %v279_v57 = vld [vmem:[%s1553_s3 + $0x98] sm:$0xff] }
  0x1e   : > { %928 = vmatprep.subr.mxu0 %v290_v13  ;;  %1011 = vmatprep.subr.mxu1 %v286_v43  ;;  %v263_v58 = vld [vmem:[%s1553_s3 + $0x18] sm:$0xff]  ;;  %v278_v59 = vld [vmem:[%s1553_s3 + $0x90] sm:$0xff]  ;;  %v277_v61 = vld [vmem:[%s1553_s3 + $0x88] sm:$0xff] }
  0x1f   : > { %929 = vmatpush3.msra.mxu0 %v274_v15  ;;  %1027 = vmatpush3.msra.mxu1 %v270_v44  ;;  %v262_v60 = vld [vmem:[%s1553_s3 + $0x10] sm:$0xff]  ;;  %v261_v62 = vld [vmem:[%s1553_s3 + $0x8] sm:$0xff]  ;;  %v276_v63 = vld [vmem:[%s1553_s3 + $0x80] sm:$0xff] }
  0x20   : > { %908 = vmatmul.mubr.msk.f32.gmra.mxu0 %vm304_vm0, %v229_v24  ;;  %930 = vmatprep.subr.mxu0 %v289_v17  ;;  %v260_v0 = vld [vmem:[%s1553_s3] sm:$0xff] }
  0x21   : > { %429 = vmatprep.mubr.f32.mxu0 %v1119_v4  ;;  %931 = vmatpush3.msra.mxu0 %v273_v21 }
  0x22   : > { %932 = vmatprep.subr.mxu0 %v288_v39  ;;  %1012 = vmatprep.subr.mxu1 %v285_v45 }
  0x23   : > { %933 = vmatpush3.msra.mxu0 %v272_v40  ;;  %1028 = vmatpush3.msra.mxu1 %v269_v46 }
  0x24   : > { %909 = vmatmul.mubr.msk.f32.gmra.mxu0 %vm304_vm0, %v230_v25  ;;  %934 = vmatprep.subr.mxu0 %v287_v41 }
  0x25   : > { %435 = vmatprep.mubr.f32.mxu0 %v1119_v4  ;;  %935 = vmatpush3.msra.mxu0 %v271_v42 }
  0x26   : > { %936 = vmatprep.subr.mxu0 %v286_v43  ;;  %1013 = vmatprep.subr.mxu1 %v284_v47 }
  0x27   : > { %937 = vmatpush3.msra.mxu0 %v270_v44  ;;  %1029 = vmatpush3.msra.mxu1 %v268_v48 }
  0x28   : > { %910 = vmatmul.mubr.msk.f32.gmra.mxu0 %vm304_vm0, %v231_v26  ;;  %938 = vmatprep.subr.mxu0 %v285_v45 }
  0x29   : > { %441 = vmatprep.mubr.f32.mxu0 %v1119_v4  ;;  %939 = vmatpush3.msra.mxu0 %v269_v46 }
  0x2a   : > { %940 = vmatprep.subr.mxu0 %v284_v47  ;;  %1014 = vmatprep.subr.mxu1 %v283_v49 }
  0x2b   : > { %941 = vmatpush3.msra.mxu0 %v268_v48  ;;  %1030 = vmatpush3.msra.mxu1 %v267_v50 }
  0x2c   : > { %911 = vmatmul.mubr.msk.f32.gmra.mxu0 %vm304_vm0, %v232_v27  ;;  %942 = vmatprep.subr.mxu0 %v283_v49 }
  0x2d   : > { %447 = vmatprep.mubr.f32.mxu0 %v1119_v4  ;;  %943 = vmatpush3.msra.mxu0 %v267_v50 }
  0x2e   : > { %944 = vmatprep.subr.mxu0 %v282_v51  ;;  %1015 = vmatprep.subr.mxu1 %v282_v51 }
  0x2f   : > { %945 = vmatpush3.msra.mxu0 %v266_v52  ;;  %1031 = vmatpush3.msra.mxu1 %v266_v52 }
  0x30   : > { %912 = vmatmul.mubr.msk.f32.gmra.mxu0 %vm304_vm0, %v233_v28  ;;  %946 = vmatprep.subr.mxu0 %v281_v53 }
  0x31   : > { %453 = vmatprep.mubr.f32.mxu0 %v1119_v4  ;;  %1016 = vmatprep.subr.mxu1 %v281_v53 }
  0x32   : > { %947 = vmatpush3.msra.mxu0 %v265_v54  ;;  %1032 = vmatpush3.msra.mxu1 %v265_v54 }
  0x33   : > { %948 = vmatprep.subr.mxu0 %v280_v55  ;;  %1017 = vmatprep.subr.mxu1 %v280_v55 }
  0x34   : > { %913 = vmatmul.mubr.msk.f32.gmra.mxu0 %vm304_vm0, %v234_v29  ;;  %1033 = vmatpush3.msra.mxu1 %v264_v56 }
  0x35   : > { %459 = vmatprep.mubr.f32.mxu0 %v1119_v4  ;;  %949 = vmatpush3.msra.mxu0 %v264_v56 }
  0x36   : > { %950 = vmatprep.subr.mxu0 %v279_v57  ;;  %1018 = vmatprep.subr.mxu1 %v279_v57 }
  0x37   : > { %951 = vmatpush3.msra.mxu0 %v263_v58  ;;  %1034 = vmatpush3.msra.mxu1 %v263_v58 }
  0x38   : > { %914 = vmatmul.mubr.msk.f32.gmra.mxu0 %vm304_vm0, %v235_v30  ;;  %952 = vmatprep.subr.mxu0 %v278_v59 }
  0x39   : > { %465 = vmatprep.mubr.f32.mxu0 %v1119_v4  ;;  %1019 = vmatprep.subr.mxu1 %v278_v59 }
  0x3a   : > { %953 = vmatpush3.msra.mxu0 %v262_v60  ;;  %1035 = vmatpush3.msra.mxu1 %v262_v60 }
  0x3b   : > { %954 = vmatprep.subr.mxu0 %v277_v61  ;;  %1020 = vmatprep.subr.mxu1 %v277_v61 }
  0x3c   : > { %915 = vmatmul.mubr.msk.f32.gmra.mxu0 %vm304_vm0, %v236_v31  ;;  %1036 = vmatpush3.msra.mxu1 %v261_v62 }
  0x3d   : > { %471 = vmatprep.mubr.f32.mxu0 %v1119_v4  ;;  %955 = vmatpush3.msra.mxu0 %v261_v62 }
  0x3e   : > { %956 = vmatprep.subr.mxu0 %v276_v63  ;;  %1021 = vmatprep.subr.mxu1 %v276_v63 }
  0x3f   : > { %957 = vmatpush3.msra.mxu0 %v260_v0  ;;  %1037 = vmatpush3.msra.mxu1 %v260_v0 }
  0x40   : > { %916 = vmatmul.mubr.msk.f32.gmra.mxu0 %vm304_vm0, %v237_v32 }
  0x41   : > { %477 = vmatprep.mubr.f32.mxu0 %v1119_v4 }
  0x44   : > { %917 = vmatmul.mubr.msk.f32.gmra.mxu0 %vm304_vm0, %v238_v33 }
  0x45   : > { %483 = vmatprep.mubr.f32.mxu0 %v1119_v4 }
  0x48   : > { %918 = vmatmul.mubr.msk.f32.gmra.mxu0 %vm304_vm0, %v239_v34 }
  0x49   : > { %489 = vmatprep.mubr.f32.mxu0 %v1119_v4 }
  0x4c   : > { %919 = vmatmul.mubr.msk.f32.gmra.mxu0 %vm304_vm0, %v240_v35 }
  0x4d   : > { %495 = vmatprep.mubr.f32.mxu0 %v1119_v4 }
  0x50   : > { %920 = vmatmul.mubr.msk.f32.gmra.mxu0 %vm304_vm0, %v241_v36 }
  0x51   : > { %501 = vmatprep.mubr.f32.mxu0 %v1119_v4 }
  0x54   : > { %921 = vmatmul.mubr.msk.f32.gmra.mxu0 %vm304_vm0, %v242_v37 }
  0x55   : > { %507 = vmatprep.mubr.f32.mxu0 %v1119_v4  ;;  %v292_v4 = vld [vmem:[%s1552_s2] sm:$0x3] }
  0x56   : > { %v1363_v6 = vrot.slane %v292_v4, %v296_v3  ;;  %v1365_v7 = vrot.slane %v292_v4, %v300_v5 }
  0x58   : > { %922 = vmatmul.mubr.msk.f32.gmra.mxu0 %vm304_vm0, %v243_v38 }
  0xdc   : > { %v419_v8 = vpop.f32.mrf.mxu0 }
  0xdd   : > { %v420_v9 = vadd.f32 %v419_v8, %v1363_v6 }
  0xde   : > { %v421_v10 = vpop.f32.mrf.mxu0 }
  0xdf   : > { %v546_v11 = vmul.f32 0.70710677, %v420_v9  ;;  %v422_v12 = vadd.f32 %v421_v10, %v1365_v7  ;;  %v514_v45 = vmul.f32 0.5, %v420_v9 }
  0xe0   : > { %v425_v13 = vpop.f32.mrf.mxu0 }
  0xe1   : > { %1047 = verf.f32 %v546_v11  ;;  %v547_v14 = vmul.f32 0.70710677, %v422_v12  ;;  %v426_v15 = vadd.f32 %v425_v13, %v1363_v6  ;;  %v515_v41 = vmul.f32 0.5, %v422_v12 }
  0xe2   : > { %v427_v16 = vpop.f32.mrf.mxu0 }
  0xe3   : > { %1049 = verf.f32 %v547_v14  ;;  %v548_v17 = vmul.f32 0.70710677, %v426_v15  ;;  %v428_v18 = vadd.f32 %v427_v16, %v1365_v7  ;;  %v516_v61 = vmul.f32 0.5, %v426_v15 }
  0xe4   : > { %v431_v19 = vpop.f32.mrf.mxu0 }
  0xe5   : > { %1051 = verf.f32 %v548_v17  ;;  %v549_v20 = vmul.f32 0.70710677, %v428_v18  ;;  %v432_v21 = vadd.f32 %v431_v19, %v1363_v6  ;;  %v517_v58 = vmul.f32 0.5, %v428_v18 }
  0xe6   : > { %v433_v22 = vpop.f32.mrf.mxu0 }
  0xe7   : > { %1053 = verf.f32 %v549_v20  ;;  %v550_v23 = vmul.f32 0.70710677, %v432_v21  ;;  %v434_v24 = vadd.f32 %v433_v22, %v1365_v7  ;;  %v518_v10 = vmul.f32 0.5, %v432_v21 }
  0xe8   : > { %v437_v25 = vpop.f32.mrf.mxu0 }
  0xe9   : > { %1055 = verf.f32 %v550_v23  ;;  %v551_v26 = vmul.f32 0.70710677, %v434_v24  ;;  %v1374_v27 = vadd.f32 %v437_v25, %v1363_v6  ;;  %v519_v12 = vmul.f32 0.5, %v434_v24 }
  0xea   : > { %v439_v28 = vpop.f32.mrf.mxu0 }
  0xeb   : > { %1057 = verf.f32 %v551_v26  ;;  %v552_v29 = vmul.f32 0.70710677, %v1374_v27  ;;  %v1378_v30 = vadd.f32 %v439_v28, %v1365_v7  ;;  %v520_v28 = vmul.f32 0.5, %v1374_v27 }
  0xec   : > { %v443_v31 = vpop.f32.mrf.mxu0 }
  0xed   : > { %1059 = verf.f32 %v552_v29  ;;  %v553_v32 = vmul.f32 0.70710677, %v1378_v30  ;;  %v1382_v33 = vadd.f32 %v443_v31, %v1363_v6  ;;  %v521_v24 = vmul.f32 0.5, %v1378_v30 }
  0xee   : > { %v1048_v34 = vpop.eup %1047  ;;  %v445_v35 = vpop.f32.mrf.mxu0 }
  0xef   : > { %1061 = verf.f32 %v553_v32  ;;  %v554_v36 = vmul.f32 0.70710677, %v1382_v33  ;;  %v610_v38 = vadd.f32 1.0, %v1048_v34  ;;  %v1386_v39 = vadd.f32 %v445_v35, %v1365_v7 }
  0xf0   : > { %v1050_v37 = vpop.eup %1049  ;;  %v449_v40 = vpop.f32.mrf.mxu0  ;;  %v522_v27 = vmul.f32 0.5, %v1382_v33 }
  0xf1   : > { %1063 = verf.f32 %v554_v36  ;;  %v1389_v42 = vadd.f32 %v449_v40, %v1363_v6  ;;  %v611_v43 = vadd.f32 1.0, %v1050_v37  ;;  %v555_v46 = vmul.f32 0.70710677, %v1386_v39 }
  0xf2   : > { %v1052_v44 = vpop.eup %1051  ;;  %v451_v47 = vpop.f32.mrf.mxu0  ;;  %v642_v52 = vmul.f32 %v610_v38, %v514_v45 }
  0xf3   : > { %v556_v48 = vmul.f32 0.70710677, %v1389_v42  ;;  %v1394_v49 = vadd.f32 %v451_v47, %v1365_v7  ;;  %v643_v50 = vmul.f32 %v611_v43, %v515_v41  ;;  %1065 = verf.f32 %v555_v46 }
  0xf4   : > { %v1054_v51 = vpop.eup %1053  ;;  %v455_v53 = vpop.f32.mrf.mxu0  ;;  %v612_v56 = vadd.f32 1.0, %v1052_v44  ;;  %v523_v41 = vmul.f32 0.5, %v1386_v39 }
  0xf5   : > { %1067 = verf.f32 %v556_v48  ;;  %v557_v54 = vmul.f32 0.70710677, %v1394_v49  ;;  %v1398_v55 = vadd.f32 %v455_v53, %v1363_v6  ;;  %745 = vmatprep.mubr.f32.mxu0 %v643_v50  ;;  %v613_v60 = vadd.f32 1.0, %v1054_v51 }
  0xf6   : > { %v1056_v57 = vpop.eup %1055  ;;  %v457_v59 = vpop.f32.mrf.mxu0  ;;  %746 = vmatmul.mubr.f32.vlgmr.msra.gmra.mxu0 %v642_v52  ;;  %v644_v8 = vmul.f32 %v612_v56, %v516_v61 }
  0xf7   : > { %1069 = verf.f32 %v557_v54  ;;  %v558_v62 = vmul.f32 0.70710677, %v1398_v55  ;;  %v1402_v63 = vadd.f32 %v457_v59, %v1365_v7  ;;  %v645_v2 = vmul.f32 %v613_v60, %v517_v58 }
  0xf8   : > { %v1058_v0 = vpop.eup %1057  ;;  %v461_v1 = vpop.f32.mrf.mxu0  ;;  %v614_v3 = vadd.f32 1.0, %v1056_v57  ;;  %v525_v54 = vmul.f32 0.5, %v1394_v49  ;;  %v524_v58 = vmul.f32 0.5, %v1389_v42  ;;  %v526_v42 = vmul.f32 0.5, %v1398_v55 }
  0xf9   : > { %1071 = verf.f32 %v558_v62  ;;  %v559_v4 = vmul.f32 0.70710677, %v1402_v63  ;;  %v1406_v5 = vadd.f32 %v461_v1, %v1363_v6  ;;  %750 = vmatprep.mubr.f32.mxu0 %v645_v2  ;;  %v615_v13 = vadd.f32 1.0, %v1058_v0 }
  0xfa   : > { %v1060_v9 = vpop.eup %1059  ;;  %v463_v11 = vpop.f32.mrf.mxu0  ;;  %751 = vmatmul.mubr.f32.gmra.mxu0 %v644_v8  ;;  %v646_v19 = vmul.f32 %v614_v3, %v518_v10  ;;  %v527_v8 = vmul.f32 0.5, %v1402_v63 }
  0xfb   : > { %1073 = verf.f32 %v559_v4  ;;  %v560_v14 = vmul.f32 0.70710677, %v1406_v5  ;;  %v1410_v15 = vadd.f32 %v463_v11, %v1365_v7  ;;  %v647_v18 = vmul.f32 %v615_v13, %v519_v12 }
  0xfc   : > { %v1062_v16 = vpop.eup %1061  ;;  %v467_v17 = vpop.f32.mrf.mxu0  ;;  %v616_v22 = vadd.f32 1.0, %v1060_v9 }
  0xfd   : > { %1075 = verf.f32 %v560_v14  ;;  %v561_v20 = vmul.f32 0.70710677, %v1410_v15  ;;  %v1414_v21 = vadd.f32 %v467_v17, %v1363_v6  ;;  %755 = vmatprep.mubr.f32.mxu1 %v647_v18  ;;  %v617_v26 = vadd.f32 1.0, %v1062_v16 }
  0xfe   : > { %v1064_v23 = vpop.eup %1063  ;;  %v469_v25 = vpop.f32.mrf.mxu0  ;;  %756 = vmatmul.mubr.f32.vlgmr.msra.gmra.mxu1 %v646_v19  ;;  %v648_v38 = vmul.f32 %v616_v22, %v520_v28 }
  0xff   : > { %1077 = verf.f32 %v561_v20  ;;  %v562_v29 = vmul.f32 0.70710677, %v1414_v21  ;;  %v1420_v31 = vadd.f32 %v469_v25, %v1365_v7  ;;  %v649_v34 = vmul.f32 %v617_v26, %v521_v24 }
 0x100   : > { %v473_v32 = vpop.f32.mrf.mxu0  ;;  %v618_v35 = vadd.f32 1.0, %v1064_v23  ;;  %v1066_v36 = vpop.eup %1065  ;;  %v529_v20 = vmul.f32 0.5, %v1410_v15  ;;  %v528_v24 = vmul.f32 0.5, %v1406_v5  ;;  %v530_v5 = vmul.f32 0.5, %v1414_v21 }
 0x101   : > { %1079 = verf.f32 %v562_v29  ;;  %v563_v37 = vmul.f32 0.70710677, %v1420_v31  ;;  %v1424_v30 = vadd.f32 %v473_v32, %v1363_v6  ;;  %760 = vmatprep.mubr.f32.mxu1 %v649_v34  ;;  %v619_v44 = vadd.f32 1.0, %v1066_v36 }
 0x102   : > { %v1068_v40 = vpop.eup %1067  ;;  %v475_v43 = vpop.f32.mrf.mxu0  ;;  %761 = vmatmul.mubr.f32.gmra.mxu1 %v648_v38  ;;  %v650_v51 = vmul.f32 %v618_v35, %v522_v27  ;;  %v531_v38 = vmul.f32 0.5, %v1420_v31 }
 0x103   : > { %1081 = verf.f32 %v563_v37  ;;  %v564_v45 = vmul.f32 0.70710677, %v1424_v30  ;;  %v1430_v46 = vadd.f32 %v475_v43, %v1365_v7  ;;  %v651_v50 = vmul.f32 %v619_v44, %v523_v41 }
 0x104   : > { %v1070_v47 = vpop.eup %1069  ;;  %v479_v48 = vpop.f32.mrf.mxu0  ;;  %v620_v39 = vadd.f32 1.0, %v1068_v40 }
 0x105   : > { %1083 = verf.f32 %v564_v45  ;;  %v565_v52 = vmul.f32 0.70710677, %v1430_v46  ;;  %v1434_v33 = vadd.f32 %v479_v48, %v1363_v6  ;;  %765 = vmatprep.mubr.f32.mxu1 %v651_v50  ;;  %v621_v57 = vadd.f32 1.0, %v1070_v47 }
 0x106   : > { %v1072_v53 = vpop.eup %1071  ;;  %v481_v56 = vpop.f32.mrf.mxu0  ;;  %766 = vmatmul.mubr.f32.gmra.mxu1 %v650_v51  ;;  %v652_v3 = vmul.f32 %v620_v39, %v524_v58 }
 0x107   : > { %1085 = verf.f32 %v565_v52  ;;  %v566_v59 = vmul.f32 0.70710677, %v1434_v33  ;;  %v1440_v60 = vadd.f32 %v481_v56, %v1365_v7  ;;  %v653_v0 = vmul.f32 %v621_v57, %v525_v54 }
 0x108   : > { %v1074_v61 = vpop.eup %1073  ;;  %v485_v62 = vpop.f32.mrf.mxu0  ;;  %v622_v1 = vadd.f32 1.0, %v1072_v53  ;;  %v533_v52 = vmul.f32 0.5, %v1430_v46  ;;  %v532_v54 = vmul.f32 0.5, %v1424_v30 }
 0x109   : > { %1087 = verf.f32 %v566_v59  ;;  %v567_v2 = vmul.f32 0.70710677, %v1440_v60  ;;  %v1444_v49 = vadd.f32 %v485_v62, %v1363_v6  ;;  %770 = vmatprep.mubr.f32.mxu1 %v653_v0  ;;  %v623_v10 = vadd.f32 1.0, %v1074_v61 }
 0x10a   : > { %v1076_v4 = vpop.eup %1075  ;;  %v487_v9 = vpop.f32.mrf.mxu0  ;;  %771 = vmatmul.mubr.f32.gmra.mxu1 %v652_v3  ;;  %v654_v17 = vmul.f32 %v622_v1, %v526_v42  ;;  %v534_v3 = vmul.f32 0.5, %v1434_v33  ;;  %v535_v30 = vmul.f32 0.5, %v1440_v60 }
 0x10b   : > { %1089 = verf.f32 %v567_v2  ;;  %v568_v11 = vmul.f32 0.70710677, %v1444_v49  ;;  %v1450_v12 = vadd.f32 %v487_v9, %v1365_v7  ;;  %v655_v16 = vmul.f32 %v623_v10, %v527_v8 }
 0x10c   : > { %v1078_v13 = vpop.eup %1077  ;;  %v491_v14 = vpop.f32.mrf.mxu0  ;;  %v624_v63 = vadd.f32 1.0, %v1076_v4  ;;  %v536_v60 = vmul.f32 0.5, %v1444_v49 }
 0x10d   : > { %1091 = verf.f32 %v568_v11  ;;  %v569_v18 = vmul.f32 0.70710677, %v1450_v12  ;;  %v1454_v55 = vadd.f32 %v491_v14, %v1363_v6  ;;  %775 = vmatprep.mubr.f32.mxu1 %v655_v16  ;;  %v625_v23 = vadd.f32 1.0, %v1078_v13 }
 0x10e   : > { %v1080_v19 = vpop.eup %1079  ;;  %v493_v22 = vpop.f32.mrf.mxu0  ;;  %776 = vmatmul.mubr.f32.gmra.mxu1 %v654_v17  ;;  %v656_v36 = vmul.f32 %v624_v63, %v528_v24  ;;  %v537_v11 = vmul.f32 0.5, %v1450_v12 }
 0x10f   : > { %1093 = verf.f32 %v569_v18  ;;  %v570_v25 = vmul.f32 0.70710677, %v1454_v55  ;;  %v1460_v26 = vadd.f32 %v493_v22, %v1365_v7  ;;  %v657_v32 = vmul.f32 %v625_v23, %v529_v20 }
 0x110   : > { %v1082_v28 = vpop.eup %1081  ;;  %v497_v29 = vpop.f32.mrf.mxu0  ;;  %v626_v34 = vadd.f32 1.0, %v1080_v19  ;;  %v538_v23 = vmul.f32 0.5, %v1454_v55 }
 0x111   : > { %1095 = verf.f32 %v570_v25  ;;  %v571_v35 = vmul.f32 0.70710677, %v1460_v26  ;;  %v1464_v15 = vadd.f32 %v497_v29, %v1363_v6  ;;  %780 = vmatprep.mubr.f32.mxu1 %v657_v32  ;;  %v627_v27 = vadd.f32 1.0, %v1082_v28 }
 0x112   : > { %v1084_v37 = vpop.eup %1083  ;;  %v499_v40 = vpop.f32.mrf.mxu0  ;;  %781 = vmatmul.mubr.f32.gmra.mxu1 %v656_v36  ;;  %v658_v48 = vmul.f32 %v626_v34, %v530_v5 }
 0x113   : > { %1097 = verf.f32 %v571_v35  ;;  %v572_v41 = vmul.f32 0.70710677, %v1464_v15  ;;  %v500_v43 = vadd.f32 %v499_v40, %v1365_v7  ;;  %v659_v47 = vmul.f32 %v627_v27, %v531_v38 }
 0x114   : > { %v1086_v44 = vpop.eup %1085  ;;  %v503_v45 = vpop.f32.mrf.mxu0  ;;  %v628_v21 = vadd.f32 1.0, %v1084_v37  ;;  %v540_v35 = vmul.f32 0.5, %v1464_v15 }
 0x115   : > { %1099 = verf.f32 %v572_v41  ;;  %v573_v50 = vmul.f32 0.70710677, %v500_v43  ;;  %v1471_v51 = vadd.f32 %v503_v45, %v1363_v6  ;;  %785 = vmatprep.mubr.f32.mxu1 %v659_v47  ;;  %v629_v53 = vadd.f32 1.0, %v1086_v44 }
 0x116   : > { %v1088_v31 = vpop.eup %1087  ;;  %v505_v39 = vpop.f32.mrf.mxu0  ;;  %786 = vmatmul.mubr.f32.gmra.mxu1 %v658_v48  ;;  %v660_v46 = vmul.f32 %v628_v21, %v532_v54  ;;  %v541_v28 = vmul.f32 0.5, %v500_v43 }
 0x117   : > { %1101 = verf.f32 %v573_v50  ;;  %v574_v56 = vmul.f32 0.70710677, %v1471_v51  ;;  %v506_v57 = vadd.f32 %v505_v39, %v1365_v7  ;;  %v661_v61 = vmul.f32 %v629_v53, %v533_v52 }
 0x118   : > { %v1090_v58 = vpop.eup %1089  ;;  %v509_v59 = vpop.f32.mrf.mxu0  ;;  %v630_v62 = vadd.f32 1.0, %v1088_v31  ;;  %v542_v27 = vmul.f32 0.5, %v1471_v51  ;;  %v1490_v51 = vld [vmem:[%s1554_s4] ss:$0 sm:$0xff] }
 0x119   : > { %1103 = verf.f32 %v574_v56  ;;  %v575_v0 = vmul.f32 0.70710677, %v506_v57  ;;  %v510_v1 = vadd.f32 %v509_v59, %v1363_v6  ;;  %790 = vmatprep.mubr.f32.mxu1 %v661_v61  ;;  %v631_v42 = vadd.f32 1.0, %v1090_v58 }
 0x11a   : > { %v1092_v2 = vpop.eup %1091  ;;  %v511_v4 = vpop.f32.mrf.mxu0  ;;  %791 = vmatmul.mubr.f32.gmra.mxu1 %v660_v46  ;;  %v662_v14 = vmul.f32 %v630_v62, %v534_v3  ;;  %v543_v37 = vmul.f32 0.5, %v506_v57 }
 0x11b   : > { %1105 = verf.f32 %v575_v0  ;;  %v576_v8 = vmul.f32 0.70710677, %v510_v1  ;;  %v512_v9 = vadd.f32 %v511_v4, %v1365_v7  ;;  %v663_v13 = vmul.f32 %v631_v42, %v535_v30 }
 0x11c   : > { %v1094_v10 = vpop.eup %1093  ;;  %v632_v17 = vadd.f32 1.0, %v1092_v2  ;;  %v539_v7 = vmul.f32 0.5, %v1460_v26  ;;  %v544_v48 = vmul.f32 0.5, %v510_v1 }
 0x11d   : > { %1107 = verf.f32 %v576_v8  ;;  %v577_v6 = vmul.f32 0.70710677, %v512_v9  ;;  %v633_v16 = vadd.f32 1.0, %v1094_v10  ;;  %795 = vmatprep.mubr.f32.mxu1 %v663_v13  ;;  %v545_v44 = vmul.f32 0.5, %v512_v9 }
 0x11e   : > { %v1096_v33 = vpop.eup %1095  ;;  %796 = vmatmul.mubr.f32.gmra.mxu1 %v662_v14  ;;  %v664_v19 = vmul.f32 %v632_v17, %v536_v60 }
 0x11f   : > { %1109 = verf.f32 %v577_v6  ;;  %v665_v18 = vmul.f32 %v633_v16, %v537_v11  ;;  %v634_v12 = vadd.f32 1.0, %v1096_v33 }
 0x120   : > { %v1098_v63 = vpop.eup %1097 }
 0x121   : > { %800 = vmatprep.mubr.f32.mxu1 %v665_v18  ;;  %v635_v20 = vadd.f32 1.0, %v1098_v63  ;;  %v666_v29 = vmul.f32 %v634_v12, %v538_v23 }
 0x122   : > { %v1100_v22 = vpop.eup %1099  ;;  %801 = vmatmul.mubr.f32.gmra.mxu1 %v664_v19 }
 0x123   : > { %v667_v24 = vmul.f32 %v635_v20, %v539_v7  ;;  %v636_v32 = vadd.f32 1.0, %v1100_v22 }
 0x124   : > { %v1102_v25 = vpop.eup %1101 }
 0x125   : > { %805 = vmatprep.mubr.f32.mxu1 %v667_v24  ;;  %v637_v49 = vadd.f32 1.0, %v1102_v25  ;;  %v668_v5 = vmul.f32 %v636_v32, %v540_v35 }
 0x126   : > { %v1104_v34 = vpop.eup %1103  ;;  %806 = vmatmul.mubr.f32.gmra.mxu1 %v666_v29 }
 0x127   : > { %v669_v26 = vmul.f32 %v637_v49, %v541_v28  ;;  %v638_v40 = vadd.f32 1.0, %v1104_v34 }
 0x128   : > { %v1106_v36 = vpop.eup %1105 }
 0x129   : > { %810 = vmatprep.mubr.f32.mxu1 %v669_v26  ;;  %v639_v38 = vadd.f32 1.0, %v1106_v36  ;;  %v670_v45 = vmul.f32 %v638_v40, %v542_v27 }
 0x12a   : > { %v1108_v55 = vpop.eup %1107  ;;  %811 = vmatmul.mubr.f32.gmra.mxu1 %v668_v5 }
 0x12b   : > { %v671_v41 = vmul.f32 %v639_v38, %v543_v37  ;;  %v640_v15 = vadd.f32 1.0, %v1108_v55 }
 0x12c   : > { %v1110_v43 = vpop.eup %1109 }
 0x12d   : > { %815 = vmatprep.mubr.f32.mxu1 %v671_v41  ;;  %v641_v47 = vadd.f32 1.0, %v1110_v43  ;;  %v672_v21 = vmul.f32 %v640_v15, %v544_v48 }
 0x12e   : > { %816 = vmatmul.mubr.f32.gmra.mxu1 %v670_v45 }
 0x12f   : > { %v673_v50 = vmul.f32 %v641_v47, %v545_v44 }
 0x131   : > { %820 = vmatprep.mubr.f32.mxu1 %v673_v50 }
 0x132   : > { %821 = vmatmul.mubr.f32.gmra.mxu1 %v672_v21 }
 0x1b6   : > { %v958_v31 = vpop.f32.mrf.mxu0 }
 0x1b8   : > { %v959_v52 = vpop.f32.mrf.mxu0 }
 0x1b9   : > { %v960_v39 = vadd.f32 %v959_v52, %v958_v31 }
 0x1ba   : > { %v961_v54 = vpop.f32.mrf.mxu0 }
 0x1bb   : > { %v748_v53 = vadd.f32 %v960_v39, %v1490_v51 }
 0x1bc   : > { %v962_v56 = vpop.f32.mrf.mxu0 }
 0x1bd   : > { %826 = vst.msk [vmem:[%s1497_s13] sm:$0xff] %vm304_vm0, %v748_v53  ;;  %v963_v57 = vadd.f32 %v962_v56, %v961_v54 }
 0x1be   : > { %v964_v58 = vpop.f32.mrf.mxu1 }
 0x1bf   : > { %v753_v59 = vadd.f32 %v963_v57, %v1490_v51 }
 0x1c0   : > { %v965_v61 = vpop.f32.mrf.mxu1 }
 0x1c1   : > { %827 = vst.msk [vmem:[%s1497_s13 + $0x8] sm:$0xff] %vm304_vm0, %v753_v59  ;;  %v966_v62 = vadd.f32 %v965_v61, %v964_v58 }
 0x1c2   : > { %v967_v0 = vpop.f32.mrf.mxu1 }
 0x1c3   : > { %v758_v1 = vadd.f32 %v966_v62, %v1490_v51 }
 0x1c4   : > { %v968_v46 = vpop.f32.mrf.mxu1 }
 0x1c5   : > { %828 = vst.msk [vmem:[%s1497_s13 + $0x10] sm:$0xff] %vm304_vm0, %v758_v1  ;;  %v969_v2 = vadd.f32 %v968_v46, %v967_v0 }
 0x1c6   : > { %v970_v3 = vpop.f32.mrf.mxu1 }
 0x1c7   : > { %v763_v30 = vadd.f32 %v969_v2, %v1490_v51 }
 0x1c8   : > { %v971_v4 = vpop.f32.mrf.mxu1 }
 0x1c9   : > { %829 = vst.msk [vmem:[%s1497_s13 + $0x18] sm:$0xff] %vm304_vm0, %v763_v30  ;;  %v972_v42 = vadd.f32 %v971_v4, %v970_v3 }
 0x1ca   : > { %v973_v8 = vpop.f32.mrf.mxu1 }
 0x1cb   : > { %v768_v9 = vadd.f32 %v972_v42, %v1490_v51 }
 0x1cc   : > { %v974_v10 = vpop.f32.mrf.mxu1 }
 0x1cd   : > { %830 = vst.msk [vmem:[%s1497_s13 + $0x20] sm:$0xff] %vm304_vm0, %v768_v9  ;;  %v975_v11 = vadd.f32 %v974_v10, %v973_v8 }
 0x1ce   : > { %v976_v13 = vpop.f32.mrf.mxu1 }
 0x1cf   : > { %v773_v14 = vadd.f32 %v975_v11, %v1490_v51 }
 0x1d0   : > { %v977_v6 = vpop.f32.mrf.mxu1 }
 0x1d1   : > { %831 = vst.msk [vmem:[%s1497_s13 + $0x28] sm:$0xff] %vm304_vm0, %v773_v14  ;;  %v978_v16 = vadd.f32 %v977_v6, %v976_v13 }
 0x1d2   : > { %v979_v17 = vpop.f32.mrf.mxu1 }
 0x1d3   : > { %v778_v33 = vadd.f32 %v978_v16, %v1490_v51 }
 0x1d4   : > { %v980_v60 = vpop.f32.mrf.mxu1 }
 0x1d5   : > { %832 = vst.msk [vmem:[%s1497_s13 + $0x30] sm:$0xff] %vm304_vm0, %v778_v33  ;;  %v981_v18 = vadd.f32 %v980_v60, %v979_v17 }
 0x1d6   : > { %v982_v63 = vpop.f32.mrf.mxu1 }
 0x1d7   : > { %v783_v7 = vadd.f32 %v981_v18, %v1490_v51 }
 0x1d8   : > { %v983_v19 = vpop.f32.mrf.mxu1 }
 0x1d9   : > { %833 = vst.msk [vmem:[%s1497_s13 + $0x38] sm:$0xff] %vm304_vm0, %v783_v7  ;;  %v984_v20 = vadd.f32 %v983_v19, %v982_v63 }
 0x1da   : > { %v985_v12 = vpop.f32.mrf.mxu1 }
 0x1db   : > { %v788_v22 = vadd.f32 %v984_v20, %v1490_v51 }
 0x1dc   : > { %v986_v23 = vpop.f32.mrf.mxu1 }
 0x1dd   : > { %834 = vst.msk [vmem:[%s1497_s13 + $0x40] sm:$0xff] %vm304_vm0, %v788_v22  ;;  %v987_v24 = vadd.f32 %v986_v23, %v985_v12 }
 0x1de   : > { %v988_v25 = vpop.f32.mrf.mxu1 }
 0x1df   : > { %v793_v28 = vadd.f32 %v987_v24, %v1490_v51 }
 0x1e0   : > { %v989_v29 = vpop.f32.mrf.mxu1 }
 0x1e1   : > { %835 = vst.msk [vmem:[%s1497_s13 + $0x48] sm:$0xff] %vm304_vm0, %v793_v28  ;;  %v990_v49 = vadd.f32 %v989_v29, %v988_v25 }
 0x1e2   : > { %v991_v32 = vpop.f32.mrf.mxu1 }
 0x1e3   : > { %v798_v34 = vadd.f32 %v990_v49, %v1490_v51 }
 0x1e4   : > { %v992_v35 = vpop.f32.mrf.mxu1 }
 0x1e5   : > { %836 = vst.msk [vmem:[%s1497_s13 + $0x50] sm:$0xff] %vm304_vm0, %v798_v34  ;;  %v993_v26 = vadd.f32 %v992_v35, %v991_v32 }
 0x1e6   : > { %v994_v36 = vpop.f32.mrf.mxu1 }
 0x1e7   : > { %v803_v37 = vadd.f32 %v993_v26, %v1490_v51 }
 0x1e8   : > { %v995_v5 = vpop.f32.mrf.mxu1 }
 0x1e9   : > { %837 = vst.msk [vmem:[%s1497_s13 + $0x58] sm:$0xff] %vm304_vm0, %v803_v37  ;;  %v996_v38 = vadd.f32 %v995_v5, %v994_v36 }
 0x1ea   : > { %v997_v40 = vpop.f32.mrf.mxu1 }
 0x1eb   : > { %v808_v55 = vadd.f32 %v996_v38, %v1490_v51 }
 0x1ec   : > { %v998_v27 = vpop.f32.mrf.mxu1 }
 0x1ed   : > { %838 = vst.msk [vmem:[%s1497_s13 + $0x60] sm:$0xff] %vm304_vm0, %v808_v55  ;;  %v999_v41 = vadd.f32 %v998_v27, %v997_v40 }
 0x1ee   : > { %v1000_v43 = vpop.f32.mrf.mxu1 }
 0x1ef   : > { %v813_v44 = vadd.f32 %v999_v41, %v1490_v51 }
 0x1f0   : > { %v1001_v45 = vpop.f32.mrf.mxu1 }
 0x1f1   : > { %839 = vst.msk [vmem:[%s1497_s13 + $0x68] sm:$0xff] %vm304_vm0, %v813_v44  ;;  %v1002_v47 = vadd.f32 %v1001_v45, %v1000_v43 }
 0x1f2   : > { %v1003_v15 = vpop.f32.mrf.mxu1 }
 0x1f3   : > { %v818_v48 = vadd.f32 %v1002_v47, %v1490_v51 }
 0x1f4   : > { %v1004_v50 = vpop.f32.mrf.mxu1 }
 0x1f5   : > { %840 = vst.msk [vmem:[%s1497_s13 + $0x70] sm:$0xff] %vm304_vm0, %v818_v48  ;;  %v1005_v21 = vadd.f32 %v1004_v50, %v1003_v15 }
 0x1f7   : > { %v823_v31 = vadd.f32 %v1005_v21, %v1490_v51 }
 0x1f9   : > { %841 = vst.msk [vmem:[%s1497_s13 + $0x78] sm:$0xff] %vm304_vm0, %v823_v31 }
 0x1fa PF: > { %s15_s18 = sadd.s32 1, %s1117_s18  }
 0x1fb   : > { %p12_p4 = scmp.ge.s32.totalorder %s15_s18, 6  }
 0x1fd   :  { %14 = sbr.rel (!%p12_p4) target bundleno = 1 (0x1), region = 70 }

</bundles_post_ra>
